<compile_context>
chip_gen: v7x
topology: tpu7x:2x2x1
jax: 0.10.0
libtpu: 0.0.40
codegen_flags: <defaults>
</compile_context>

<pallas_src>
import jax
import jax.numpy as jnp
from jax.experimental import pallas as pl
from jax.experimental.pallas import tpu as pltpu  # noqa: F401  (no grid/scratch needed)

EPS = 1e-5

C_IN, L_IN = 7, 6
K = 3
C1, L1 = 7, L_IN - K + 1          # conv1 output: (7, 4)
C2, L2 = 8, L1 - K + 1            # conv2 output: (8, 2)
CP = 8                            # sublane channel padding
W1C = K * C_IN                    # 21 : fused conv1 weight lanes (col = k*7 + ci)
W2C = K * CP                      # 24 : fused conv2 weight lanes (col = k*8 + ci)
BN_OFF = W1C + W2C                # 45 : start of the 4 BN lane-columns
PCOLS = BN_OFF + 4                # 49 : total param-slab lanes
OCOLS = L1 + 2 * L2               # 8  : [t1 | t2 | y] output lanes
INV_L1 = 1.0 / L1
INV_L2 = 1.0 / L2


def _model_kernel(p_ref, x_ref, o_ref):
    # ---- unpack the precomputed parameter slab (static lane slices) ----
    g1 = p_ref[:, BN_OFF + 0:BN_OFF + 1]          # (CP, 1), padded rows are 0
    be1 = p_ref[:, BN_OFF + 1:BN_OFF + 2]
    g2 = p_ref[:, BN_OFF + 2:BN_OFF + 3]
    be2 = p_ref[:, BN_OFF + 3:BN_OFF + 4]
    x = x_ref[0]                                  # (C_IN, L_IN) = (7, 6), raw

    # ---- conv1: three accumulated MXU dots on lane slices of the slab ----
    # (conv bias omitted: cancelled exactly by the BN mean subtraction below;
    #  padded output-channel row of the weight is zero -> acc1 row 7 == 0)
    acc1 = jnp.dot(p_ref[:, 0:C_IN], x[:, 0:L1],
                   preferred_element_type=jnp.float32)               # (CP, L1)
    for k in range(1, K):
        acc1 = acc1 + jnp.dot(p_ref[:, k * C_IN:(k + 1) * C_IN],
                              x[:, k:k + L1],
                              preferred_element_type=jnp.float32)

    # ---- bn1 (training mode, biased batch stats over N*L, N=1) + relu ----
    # independent sum / sum-of-squares reductions overlap in the XLU
    s1 = jnp.sum(acc1, axis=1, keepdims=True)
    q1 = jnp.sum(acc1 * acc1, axis=1, keepdims=True)
    m1 = s1 * INV_L1
    v1 = q1 * INV_L1 - m1 * m1
    t1 = jnp.maximum((acc1 - m1) * jax.lax.rsqrt(v1 + EPS) * g1 + be1, 0.0)

    # ---- conv2 as ONE matmul: aligned 8-row sublane concat im2col ----
    p2 = jnp.concatenate([t1[:, k:k + L2] for k in range(K)], axis=0)  # (K*CP, L2)
    acc2 = jnp.dot(p_ref[:, W1C:W1C + W2C], p2,
                   preferred_element_type=jnp.float32)                 # (CP, L2)

    # ---- bn2 + relu ----
    s2 = jnp.sum(acc2, axis=1, keepdims=True)
    q2 = jnp.sum(acc2 * acc2, axis=1, keepdims=True)
    m2 = s2 * INV_L2
    v2 = q2 * INV_L2 - m2 * m2
    t2 = jnp.maximum((acc2 - m2) * jax.lax.rsqrt(v2 + EPS) * g2 + be2, 0.0)

    # ---- single lane-packed output slab: [t1 | t2 | tanh(t2)] ----
    o_ref[...] = jnp.concatenate([t1, t2, jnp.tanh(t2)], axis=1)


def prepare_params(params):
    """One-time (hoisted) packing of all parameters into a single (CP, PCOLS)
    float32 slab.  Run ONCE and reuse the result across forward calls."""
    (w1, b1, g1, be1, w2, b2, g2, be2) = params
    del b1, b2  # mathematically cancelled by train-mode BN mean subtraction

    # conv1 weight: (C1, C_IN, K) -> (C1, K, C_IN) -> (C1, K*C_IN), pad rows to CP
    w1f = jnp.transpose(w1, (0, 2, 1)).reshape(C1, W1C)
    w1f = jnp.pad(w1f, ((0, CP - C1), (0, 0)))                      # (CP, 21)

    # conv2 weight: (C2, C_IN, K) -> (C2, K, C_IN) -> pad ci to CP -> (C2, K*CP)
    w2f = jnp.transpose(w2, (0, 2, 1))                               # (C2, K, C_IN)
    w2f = jnp.pad(w2f, ((0, 0), (0, 0), (0, CP - C_IN))).reshape(C2, W2C)

    def col(v):
        return jnp.pad(v.reshape(-1, 1).astype(jnp.float32),
                       ((0, CP - v.shape[0]), (0, 0)))

    return jnp.concatenate(
        [w1f.astype(jnp.float32), w2f.astype(jnp.float32),
         col(g1), col(be1), col(g2), col(be2)], axis=1)              # (CP, PCOLS)


@jax.jit
def model_forward(x, p_slab):
    """x: (1, C_IN, L_IN) float32 (NCL); p_slab: output of prepare_params().
    Returns (t1, t2, y) with shapes (1,7,4), (1,8,2), (1,8,2) — identical to
    the PyTorch module."""
    full = lambda shape: pl.BlockSpec(shape, lambda: (0,) * len(shape))
    out = pl.pallas_call(
        _model_kernel,
        out_shape=jax.ShapeDtypeStruct((CP, OCOLS), jnp.float32),
        in_specs=[full((CP, PCOLS)), full((1, C_IN, L_IN))],
        out_specs=full((CP, OCOLS)),
    )(p_slab, x)

    t1 = out[:C1, 0:L1][None]
    t2 = out[:C2, L1:L1 + L2][None]
    y = out[:C2, L1 + L2:L1 + 2 * L2][None]
    return t1, t2, y


def init_params(key):
    """Deterministic synthetic parameters in native torch layouts:
    conv weight (C_out, C_in, K), bias/gamma/beta as 1-D (C,)."""
    k1, k2, k3, k4 = jax.random.split(key, 4)
    bound1 = 1.0 / (C_IN * K) ** 0.5
    w1 = jax.random.uniform(k1, (C1, C_IN, K), jnp.float32, -bound1, bound1)
    b1 = jax.random.uniform(k2, (C1,), jnp.float32, -bound1, bound1)
    bound2 = 1.0 / (C1 * K) ** 0.5
    w2 = jax.random.uniform(k3, (C2, C1, K), jnp.float32, -bound2, bound2)
    b2 = jax.random.uniform(k4, (C2,), jnp.float32, -bound2, bound2)
    g1 = jnp.ones((C1,), jnp.float32)
    be1 = jnp.zeros((C1,), jnp.float32)
    g2 = jnp.ones((C2,), jnp.float32)
    be2 = jnp.zeros((C2,), jnp.float32)
    return (w1, b1, g1, be1, w2, b2, g2, be2)


def _reference(x, params):
    """Plain-JAX reference with full PyTorch semantics (conv biases INCLUDED)
    to validate that dropping them inside the kernel is exact up to rounding."""
    (w1, b1, g1, be1, w2, b2, g2, be2) = params
    x2d = x[0]

    def conv(xx, w, b):
        c_out, c_in, k = w.shape
        lout = xx.shape[1] - k + 1
        acc = jnp.zeros((c_out, lout), jnp.float32)
        for kk in range(k):
            acc = acc + w[:, :, kk] @ xx[:, kk:kk + lout]
        return acc + b[:, None]

    def bn(xx, g, be):
        m = jnp.mean(xx, axis=1, keepdims=True)
        v = jnp.mean((xx - m) ** 2, axis=1, keepdims=True)
        return (xx - m) / jnp.sqrt(v + EPS) * g[:, None] + be[:, None]

    t1 = jax.nn.relu(bn(conv(x2d, w1, b1), g1, be1))
    t2 = jax.nn.relu(bn(conv(t1, w2, b2), g2, be2))
    return t1[None], t2[None], jnp.tanh(t2)[None]


# TODO(synk): PyTorch BatchNorm1d in train mode also updates running_mean /
# running_var buffers (with the UNBIASED variance); this functional forward
# does not reproduce that side effect (only the returned tensors are computed).

if __name__ == "__main__":
    key = jax.random.PRNGKey(0)
    kx, kp = jax.random.split(key)
    x = jax.random.normal(kx, (1, C_IN, L_IN), jnp.float32)   # matches torch.randn(1, 7, 6)
    params = init_params(kp)

    p_slab = jax.block_until_ready(prepare_params(params))    # hoisted, done once
    t1, t2, y = jax.block_until_ready(model_forward(x, p_slab))
    r1, r2, ry = _reference(x, params)

    assert t1.shape == (1, C1, L1) and t2.shape == (1, C2, L2) and y.shape == (1, C2, L2)
    # Tolerance covers float-rounding from the mathematically-cancelled conv
    # biases (kernel omits them; reference keeps them) and the E[x^2]-m^2
    # variance formulation.
    assert jnp.allclose(t1, r1, atol=1e-4, rtol=1e-4), "t1 mismatch"
    assert jnp.allclose(t2, r2, atol=1e-4, rtol=1e-4), "t2 mismatch"
    assert jnp.allclose(y, ry, atol=1e-4, rtol=1e-4), "y mismatch"
    print("KERNEL_OK")
</pallas_src>

<mosaic_0001>
module attributes {stable_mosaic.version = 11 : i64} {
  func.func @_model_kernel(%arg0: memref<8x49xf32, #tpu.memory_space<vmem>>, %arg1: memref<1x7x6xf32, #tpu.memory_space<vmem>>, %arg2: memref<8x8xf32, #tpu.memory_space<vmem>>) attributes {dimension_semantics = [], scalar_prefetch = 0 : i64, scratch_operands = 0 : i64, tpu.core_type = #tpu.core_type<tc>} {
    %c0 = arith.constant 0 : index
    %c45 = arith.constant 45 : index
    %0 = vector.load %arg0[%c0, %c45] : memref<8x49xf32, #tpu.memory_space<vmem>>, vector<8x1xf32>
    %c0_0 = arith.constant 0 : index
    %c46 = arith.constant 46 : index
    %1 = vector.load %arg0[%c0_0, %c46] : memref<8x49xf32, #tpu.memory_space<vmem>>, vector<8x1xf32>
    %c0_1 = arith.constant 0 : index
    %c47 = arith.constant 47 : index
    %2 = vector.load %arg0[%c0_1, %c47] : memref<8x49xf32, #tpu.memory_space<vmem>>, vector<8x1xf32>
    %c0_2 = arith.constant 0 : index
    %c48 = arith.constant 48 : index
    %3 = vector.load %arg0[%c0_2, %c48] : memref<8x49xf32, #tpu.memory_space<vmem>>, vector<8x1xf32>
    %c0_3 = arith.constant 0 : index
    %c0_4 = arith.constant 0 : index
    %c0_5 = arith.constant 0 : index
    %4 = vector.load %arg1[%c0_3, %c0_4, %c0_5] : memref<1x7x6xf32, #tpu.memory_space<vmem>>, vector<1x7x6xf32>
    %5 = vector.shape_cast %4 : vector<1x7x6xf32> to vector<7x6xf32>
    %c0_6 = arith.constant 0 : index
    %c0_7 = arith.constant 0 : index
    %6 = vector.load %arg0[%c0_6, %c0_7] : memref<8x49xf32, #tpu.memory_space<vmem>>, vector<8x7xf32>
    %7 = vector.extract_strided_slice %5 {offsets = [0, 0], sizes = [7, 4], strides = [1, 1]} : vector<7x6xf32> to vector<7x4xf32>
    %cst = arith.constant dense<0.000000e+00> : vector<8x4xf32>
    %8 = tpu.matmul %6, %7, %cst {dimension_numbers = #tpu.dot_dimension_numbers<[1], [0], [0], [1], [0, 0, 1, 1], [], []>} : vector<8x7xf32>, vector<7x4xf32>, vector<8x4xf32> -> vector<8x4xf32>
    %c0_8 = arith.constant 0 : index
    %c7 = arith.constant 7 : index
    %9 = vector.load %arg0[%c0_8, %c7] : memref<8x49xf32, #tpu.memory_space<vmem>>, vector<8x7xf32>
    %10 = vector.extract_strided_slice %5 {offsets = [0, 1], sizes = [7, 4], strides = [1, 1]} : vector<7x6xf32> to vector<7x4xf32>
    %cst_9 = arith.constant dense<0.000000e+00> : vector<8x4xf32>
    %11 = tpu.matmul %9, %10, %cst_9 {dimension_numbers = #tpu.dot_dimension_numbers<[1], [0], [0], [1], [0, 0, 1, 1], [], []>} : vector<8x7xf32>, vector<7x4xf32>, vector<8x4xf32> -> vector<8x4xf32>
    %12 = arith.addf %8, %11 : vector<8x4xf32>
    %c0_10 = arith.constant 0 : index
    %c14 = arith.constant 14 : index
    %13 = vector.load %arg0[%c0_10, %c14] : memref<8x49xf32, #tpu.memory_space<vmem>>, vector<8x7xf32>
    %14 = vector.extract_strided_slice %5 {offsets = [0, 2], sizes = [7, 4], strides = [1, 1]} : vector<7x6xf32> to vector<7x4xf32>
    %cst_11 = arith.constant dense<0.000000e+00> : vector<8x4xf32>
    %15 = tpu.matmul %13, %14, %cst_11 {dimension_numbers = #tpu.dot_dimension_numbers<[1], [0], [0], [1], [0, 0, 1, 1], [], []>} : vector<8x7xf32>, vector<7x4xf32>, vector<8x4xf32> -> vector<8x4xf32>
    %16 = arith.addf %12, %15 : vector<8x4xf32>
    %cst_12 = arith.constant dense<0.000000e+00> : vector<8xf32>
    %17 = vector.multi_reduction <add>, %16, %cst_12 [1] : vector<8x4xf32> to vector<8xf32>
    %18 = vector.shape_cast %17 : vector<8xf32> to vector<8x1xf32>
    %19 = arith.mulf %16, %16 : vector<8x4xf32>
    %cst_13 = arith.constant dense<0.000000e+00> : vector<8xf32>
    %20 = vector.multi_reduction <add>, %19, %cst_13 [1] : vector<8x4xf32> to vector<8xf32>
    %21 = vector.shape_cast %20 : vector<8xf32> to vector<8x1xf32>
    %cst_14 = arith.constant 2.500000e-01 : f32
    %22 = vector.broadcast %cst_14 : f32 to vector<8x1xf32>
    %23 = arith.mulf %18, %22 : vector<8x1xf32>
    %cst_15 = arith.constant 2.500000e-01 : f32
    %24 = vector.broadcast %cst_15 : f32 to vector<8x1xf32>
    %25 = arith.mulf %21, %24 : vector<8x1xf32>
    %26 = arith.mulf %23, %23 : vector<8x1xf32>
    %27 = arith.subf %25, %26 : vector<8x1xf32>
    %28 = vector.broadcast %23 : vector<8x1xf32> to vector<8x4xf32>
    %29 = arith.subf %16, %28 : vector<8x4xf32>
    %cst_16 = arith.constant 9.99999974E-6 : f32
    %30 = vector.broadcast %cst_16 : f32 to vector<8x1xf32>
    %31 = arith.addf %27, %30 : vector<8x1xf32>
    %32 = math.rsqrt %31 : vector<8x1xf32>
    %33 = vector.broadcast %32 : vector<8x1xf32> to vector<8x4xf32>
    %34 = arith.mulf %29, %33 : vector<8x4xf32>
    %35 = vector.broadcast %0 : vector<8x1xf32> to vector<8x4xf32>
    %36 = arith.mulf %34, %35 : vector<8x4xf32>
    %37 = vector.broadcast %1 : vector<8x1xf32> to vector<8x4xf32>
    %38 = arith.addf %36, %37 : vector<8x4xf32>
    %cst_17 = arith.constant 0.000000e+00 : f32
    %39 = vector.broadcast %cst_17 : f32 to vector<8x4xf32>
    %40 = arith.maximumf %38, %39 : vector<8x4xf32>
    %41 = vector.extract_strided_slice %40 {offsets = [0, 0], sizes = [8, 2], strides = [1, 1]} : vector<8x4xf32> to vector<8x2xf32>
    %42 = vector.extract_strided_slice %40 {offsets = [0, 1], sizes = [8, 2], strides = [1, 1]} : vector<8x4xf32> to vector<8x2xf32>
    %43 = vector.extract_strided_slice %40 {offsets = [0, 2], sizes = [8, 2], strides = [1, 1]} : vector<8x4xf32> to vector<8x2xf32>
    %44 = tpu.concatenate %41, %42, %43 in 0 : vector<8x2xf32>, vector<8x2xf32>, vector<8x2xf32> -> vector<24x2xf32>
    %c0_18 = arith.constant 0 : index
    %c21 = arith.constant 21 : index
    %45 = vector.load %arg0[%c0_18, %c21] : memref<8x49xf32, #tpu.memory_space<vmem>>, vector<8x24xf32>
    %cst_19 = arith.constant dense<0.000000e+00> : vector<8x2xf32>
    %46 = tpu.matmul %45, %44, %cst_19 {dimension_numbers = #tpu.dot_dimension_numbers<[1], [0], [0], [1], [0, 0, 1, 1], [], []>} : vector<8x24xf32>, vector<24x2xf32>, vector<8x2xf32> -> vector<8x2xf32>
    %cst_20 = arith.constant dense<0.000000e+00> : vector<8xf32>
    %47 = vector.multi_reduction <add>, %46, %cst_20 [1] : vector<8x2xf32> to vector<8xf32>
    %48 = vector.shape_cast %47 : vector<8xf32> to vector<8x1xf32>
    %49 = arith.mulf %46, %46 : vector<8x2xf32>
    %cst_21 = arith.constant dense<0.000000e+00> : vector<8xf32>
    %50 = vector.multi_reduction <add>, %49, %cst_21 [1] : vector<8x2xf32> to vector<8xf32>
    %51 = vector.shape_cast %50 : vector<8xf32> to vector<8x1xf32>
    %cst_22 = arith.constant 5.000000e-01 : f32
    %52 = vector.broadcast %cst_22 : f32 to vector<8x1xf32>
    %53 = arith.mulf %48, %52 : vector<8x1xf32>
    %cst_23 = arith.constant 5.000000e-01 : f32
    %54 = vector.broadcast %cst_23 : f32 to vector<8x1xf32>
    %55 = arith.mulf %51, %54 : vector<8x1xf32>
    %56 = arith.mulf %53, %53 : vector<8x1xf32>
    %57 = arith.subf %55, %56 : vector<8x1xf32>
    %58 = vector.broadcast %53 : vector<8x1xf32> to vector<8x2xf32>
    %59 = arith.subf %46, %58 : vector<8x2xf32>
    %cst_24 = arith.constant 9.99999974E-6 : f32
    %60 = vector.broadcast %cst_24 : f32 to vector<8x1xf32>
    %61 = arith.addf %57, %60 : vector<8x1xf32>
    %62 = math.rsqrt %61 : vector<8x1xf32>
    %63 = vector.broadcast %62 : vector<8x1xf32> to vector<8x2xf32>
    %64 = arith.mulf %59, %63 : vector<8x2xf32>
    %65 = vector.broadcast %2 : vector<8x1xf32> to vector<8x2xf32>
    %66 = arith.mulf %64, %65 : vector<8x2xf32>
    %67 = vector.broadcast %3 : vector<8x1xf32> to vector<8x2xf32>
    %68 = arith.addf %66, %67 : vector<8x2xf32>
    %cst_25 = arith.constant 0.000000e+00 : f32
    %69 = vector.broadcast %cst_25 : f32 to vector<8x2xf32>
    %70 = arith.maximumf %68, %69 : vector<8x2xf32>
    %71 = math.tanh %70 : vector<8x2xf32>
    %72 = tpu.concatenate %40, %70, %71 in 1 : vector<8x4xf32>, vector<8x2xf32>, vector<8x2xf32> -> vector<8x8xf32>
    %c0_26 = arith.constant 0 : index
    %c0_27 = arith.constant 0 : index
    %73 = vector.load %arg2[%c0_26, %c0_27] : memref<8x8xf32, #tpu.memory_space<vmem>>, vector<8x8xf32>
    tpu.vector_store %arg2[%c0_26, %c0_27], %72 {strides = array<i32>} : memref<8x8xf32, #tpu.memory_space<vmem>>, vector<8x8xf32>,
    return
  }
}

</mosaic_0001>

<bundles_post_ra>
// kernel: model_forward.1
= control target key start
LH: loop header
LB: loop body
LE: loop exit
PB: predicated region body
PF: predicated region fallthrough
CT: control target
= control target key end

     0   :  { %vm22_vm0 = vcmask 1046528   ;;  %v473_v2 = vmov 0.0   ;;  %vm474_vm1 = vmmov 0   ;;  %vm19_vm2 = vcmask 56320   ;;  %s475_s13 = smov 127   ;;  %s476_s14 = smov 121   ;;  %s546_s1 = inlined_call_operand.vmem [shape: f32[1,7,6], index: 1, kind: input, shape index: {}]   ;;  %s547_s0 = inlined_call_operand.vmem [shape: f32[8,49], index: 0, kind: input, shape index: {}]   ;;  %s548_s2 = inlined_call_operand.vmem [shape: f32[8,8], index: 2, kind: output, shape index: {}]  }
   0x1   :  { %v12_v0 = vld [vmem:[%s546_s1] sm:$0x7f]  ;;  %424 = vmatprep.subr.mxu0 %v473_v2  ;;  %426 = vmatprep.mubr.msk.f32.mxu0 %vm474_vm1, %v473_v2  ;;  %s478_s1 = smov 114   ;;  %v479_v7 = vmov 45   ;;  %v480_v8 = vmov 46   ;;  %vm248_vm3 = vcmask 31744  }
   0x2   :  { %v508_v1 = vld [vmem:[%s547_s0] sm:$0xff]  ;;  %17 = vrot.lane.b32.xlu0 %v12_v0, %s475_s13  ;;  %425 = vmatpush3.msk.msra.mxu0 %vm22_vm0, %v12_v0  ;;  %s477_s0 = smov 126   ;;  %v481_v24 = vmov 0.0|0.0   ;;  %s482_s15 = smov 107   ;;  %vm284_vm4 = vcmask 195584   ;;  %v483_v37 = vmov 47  }
   0x3   :  { %14 = vrot.lane.b32.xlu1 %v508_v1, %s476_s14  ;;  %419 = vmatprep.subr.mxu1 %v473_v2  ;;  %v484_v38 = vmov 48   ;;  %vm357_vm5 = vcmask 15360   ;;  %s485_s16 = smov 4   ;;  %s486_s17 = smov 6   ;;  %vm394_vm6 = vcmask 48128   ;;  %vm396_vm7 = vcmask 64512  }
   0x4   :  { %427 = vmatmul.mubr.msk.f32.vlgmr.msra.gmra.mrb[0].mxu0 %vm19_vm2, %v508_v1  ;;  %429 = vmatprep.subr.mxu0 %v473_v2 }
   0x5   :  { %421 = vmatprep.mubr.msk.f32.mxu1 %vm474_vm1, %v473_v2  ;;  %431 = vmatprep.mubr.msk.f32.mxu0 %vm474_vm1, %v473_v2 }
   0x6   :  { %171 = vrot.lane.b32.xlu0 %v12_v0, %s477_s0  ;;  %464 = vset.pattern.permute.xlu1 %v480_v8 }
   0x7   :  { %169 = vrot.lane.b32.xlu1 %v508_v1, %s478_s1  ;;  %463 = vset.pattern.permute.xlu0 %v479_v7 }
  0x74   :  { %v18_v3 = vpop.permute.xlu0 %17 }
  0x75   :  { %v15_v4 = vpop.permute.xlu1 %14  ;;  %420 = vmatpush3.msk.msra.mxu1 %vm22_vm0, %v18_v3 }
  0x76   :  { %422 = vmatmul.mubr.msk.f32.vlgmr.msra.gmra.mrb[0].mxu1 %vm19_vm2, %v15_v4  ;;  %443 = vmatprep.subr.bf16.mxu1 %v481_v24 }
  0x77   :  { %440 = vmatprep.mubr.msk.f32.mxu1 %vm474_vm1, %v473_v2 }
  0x78   :  { %v172_v5 = vpop.permute.xlu0 %171 }
  0x79   :  { %v170_v6 = vpop.permute.xlu1 %169  ;;  %430 = vmatpush3.msk.msra.mxu0 %vm22_vm0, %v172_v5 }
  0x7a   :  { %432 = vmatmul.mubr.msk.f32.vlgmr.msra.gmra.mrb[0].mxu0 %vm19_vm2, %v170_v6 }
 0x149   :  { %v91_v9 = vpop.f32.mrb[0].mxu1 }
 0x14a   :  { %v423_v10 = vpop.f32.mrb[1].mxu1 }
 0x14d   :  { %v243_v11 = vpop.f32.mrb[0].mxu0 }
 0x14e   :  { %v446_v12 = vadd.f32 %v243_v11, %v91_v9  ;;  %v433_v13 = vpop.f32.mrb[1].mxu0 }
 0x150   :  { %v249_v14 = vsel %vm248_vm3, %v446_v12, 0.0  ;;  %v252_v15 = vmul.f32 %v446_v12, %v446_v12 }
 0x151   :  { %250 = vadd.xlane.f32.xlu0 %v249_v14 }
 0x152   :  { %v253_v16 = vsel %vm248_vm3, %v252_v15, 0.0 }
 0x153   :  { %254 = vadd.xlane.f32.xlu1 %v253_v16 }
 0x164   :  { %270 = vperm.xlu1 %464, %v508_v1  }
 0x167   :  { %265 = vperm.xlu0 %463, %v508_v1  }
 0x168   :  { %465 = vset.pattern.permute.xlu1 %v483_v37 }
 0x16b   :  { %466 = vset.pattern.permute.xlu0 %v484_v38 }
 0x1de   :  { %v251_v17 = vpop.xlane.xlu0 %250 }
 0x1df   :  { %v256_v18 = vmul.f32 0.25, %v251_v17 }
 0x1e0   :  { %v255_v19 = vpop.xlane.xlu1 %254 }
 0x1e1   :  { %v258_v20 = vmul.f32 %v256_v18, %v256_v18  ;;  %v257_v21 = vmul.f32 0.25, %v255_v19  ;;  %v260_v25 = vsub.f32 %v446_v12, %v256_v18 }
 0x1e3   :  { %v259_v22 = vsub.f32 %v257_v21, %v258_v20 }
 0x1e4   :  { %v271_v29 = vpop.permute.xlu1 %270 }
 0x1e5   :  { %v261_v23 = vadd.f32 1e-05, %v259_v22 }
 0x1e6   :  { %v266_v27 = vpop.permute.xlu0 %265 }
 0x1e7   :  { %467 = vrsqrt.f32 %v261_v23 }
 0x1f1   :  { %v468_v26 = vpop.eup %467 }
 0x1f2   :  { %v263_v28 = vmul.f32 %v468_v26, %v260_v25 }
 0x1f4   :  { %v268_v30 = vmul.f32 %v266_v27, %v263_v28 }
 0x1f6   :  { %v273_v31 = vadd.f32 %v271_v29, %v268_v30 }
 0x1f8   :  { %v274_v32 = vmax.f32 %v273_v31, 0.0 }
 0x1fa   :  { %276 = vrot.lane.b32.xlu1 %v274_v32, %s475_s13 }
 0x1fe   :  { %279 = vrot.lane.b32.xlu1 %v274_v32, %s477_s0 }
 0x202   :  { %282 = vrot.lane.b32.xlu1 %v508_v1, %s482_s15 }
 0x26c   :  { %v277_v33 = vpop.permute.xlu1 %276 }
 0x26d   :  { %v444_v34 = vpack.c.bf16 %v277_v33, %v274_v32 }
 0x26f   :  { %445 = vmatpush3.bf16.msra.mxu1 %v444_v34 }
 0x270   :  { %v280_v35 = vpop.permute.xlu1 %279  ;;  %438 = vmatprep.subr.mxu1 %v473_v2 }
 0x273   :  { %439 = vmatpush3.msra.mxu1 %v280_v35 }
 0x274   :  { %v283_v36 = vpop.permute.xlu1 %282 }
 0x275   :  { %441 = vmatmul.mubr.msk.f32.vlgmr.msra.gmra.mrb[2].mxu1 %vm284_vm4, %v283_v36 }
 0x348   :  { %v353_v39 = vpop.f32.mrb[2].mxu1 }
 0x349   :  { %v358_v40 = vsel %vm357_vm5, %v353_v39, 0.0  ;;  %v361_v41 = vmul.f32 %v353_v39, %v353_v39  ;;  %v442_v42 = vpop.f32.mrb[3].mxu1 }
 0x34a   :  { %359 = vadd.xlane.f32.xlu1 %v358_v40 }
 0x34b   :  { %v362_v43 = vsel %vm357_vm5, %v361_v41, 0.0 }
 0x34c   :  { %363 = vadd.xlane.f32.xlu0 %v362_v43 }
 0x35b   :  { %374 = vperm.xlu1 %465, %v508_v1  }
 0x362   :  { %379 = vperm.xlu0 %466, %v508_v1  }
 0x3d7   :  { %v360_v44 = vpop.xlane.xlu1 %359 }
 0x3d8   :  { %v365_v45 = vmul.f32 0.5, %v360_v44 }
 0x3d9   :  { %v364_v46 = vpop.xlane.xlu0 %363 }
 0x3da   :  { %v367_v47 = vmul.f32 %v365_v45, %v365_v45  ;;  %v366_v48 = vmul.f32 0.5, %v364_v46  ;;  %v369_v51 = vsub.f32 %v353_v39, %v365_v45 }
 0x3db   :  { %v375_v53 = vpop.permute.xlu1 %374 }
 0x3dc   :  { %v368_v49 = vsub.f32 %v366_v48, %v367_v47 }
 0x3de   :  { %v370_v50 = vadd.f32 1e-05, %v368_v49 }
 0x3e0   :  { %469 = vrsqrt.f32 %v370_v50 }
 0x3e1   :  { %v380_v55 = vpop.permute.xlu0 %379 }
 0x3ea   :  { %v470_v52 = vpop.eup %469 }
 0x3eb   :  { %v372_v54 = vmul.f32 %v470_v52, %v369_v51 }
 0x3ed   :  { %v377_v56 = vmul.f32 %v375_v53, %v372_v54 }
 0x3ef   :  { %v382_v57 = vadd.f32 %v380_v55, %v377_v56 }
 0x3f1   :  { %v383_v58 = vmax.f32 %v382_v57, 0.0 }
 0x3f3   :  { %471 = vtanh.f32 %v383_v58  ;;  %386 = vrot.lane.b32.xlu1 %v383_v58, %s485_s16 }
 0x3fd   :  { %v472_v59 = vpop.eup %471 }
 0x3fe   :  { %390 = vrot.lane.b32.xlu1 %v472_v59, %s486_s17 }
 0x465   :  { %v387_v60 = vpop.permute.xlu1 %386 }
 0x466   :  { %v393_v61 = vsel %vm248_vm3, %v274_v32, %v387_v60 }
 0x470   :  { %v391_v62 = vpop.permute.xlu1 %390 }
 0x471   :  { %v395_v63 = vsel %vm394_vm6, %v393_v61, %v391_v62 }
 0x472   :  { %397 = vst.msk [vmem:[%s548_s2] sm:$0xff] %vm396_vm7, %v395_v63 }

</bundles_post_ra>
